<compile_context>
chip_gen: v6e
topology: v6e:2x2x1
jax: 0.10.0
libtpu: 0.0.40
codegen_flags: <defaults>
</compile_context>

<pallas_src>
import math

import jax
import jax.numpy as jnp
from jax import lax
from jax.experimental import pallas as pl
from jax.experimental.pallas import tpu as pltpu


def _gelu_erf(x):
    # HuggingFace-style gelu: x * 0.5 * (1 + erf(x / sqrt(2)))
    return x * 0.5 * (1.0 + lax.erf(x / math.sqrt(2.0)))


# ----------------------------------------------------------------------------
# Kernels
# ----------------------------------------------------------------------------
def _ffn_kernel_single(x_ref, w1_ref, b1_ref, w2_ref, b2_ref, o_ref):
    """Single F step: no accumulator needed, weights have constant block index."""
    h = jnp.dot(x_ref[...], w1_ref[...], preferred_element_type=jnp.float32)
    h = _gelu_erf(h + b1_ref[...])
    y = jnp.dot(h.astype(w2_ref.dtype), w2_ref[...],
                preferred_element_type=jnp.float32)
    o_ref[...] = (y + b2_ref[...]).astype(o_ref.dtype)


def _ffn_kernel_acc_out(x_ref, w1_ref, b1_ref, w2_ref, b2_ref, o_ref):
    """Multi F step, f32 output: accumulate directly into the resident o_ref."""
    f = pl.program_id(1)

    @pl.when(f == 0)
    def _():
        o_ref[...] = jnp.zeros_like(o_ref)

    h = jnp.dot(x_ref[...], w1_ref[...], preferred_element_type=jnp.float32)
    h = _gelu_erf(h + b1_ref[...])
    o_ref[...] += jnp.dot(h.astype(w2_ref.dtype), w2_ref[...],
                          preferred_element_type=jnp.float32)

    @pl.when(f == pl.num_programs(1) - 1)
    def _():
        o_ref[...] += b2_ref[...]


def _ffn_kernel_acc_scratch(x_ref, w1_ref, b1_ref, w2_ref, b2_ref, o_ref,
                            acc_ref):
    """Multi F step, low-precision output: f32 VMEM scratch accumulator."""
    f = pl.program_id(1)

    @pl.when(f == 0)
    def _():
        acc_ref[...] = jnp.zeros_like(acc_ref)

    h = jnp.dot(x_ref[...], w1_ref[...], preferred_element_type=jnp.float32)
    h = _gelu_erf(h + b1_ref[...])
    acc_ref[...] += jnp.dot(h.astype(w2_ref.dtype), w2_ref[...],
                            preferred_element_type=jnp.float32)

    @pl.when(f == pl.num_programs(1) - 1)
    def _():
        o_ref[...] = (acc_ref[...] + b2_ref[...]).astype(o_ref.dtype)


# ----------------------------------------------------------------------------
# Wrapper helpers
# ----------------------------------------------------------------------------
def _round_up(v, m):
    return (v + m - 1) // m * m


def _maybe_pad2d(a, rows, cols):
    pr, pc = rows - a.shape[0], cols - a.shape[1]
    if pr == 0 and pc == 0:
        return a
    return jnp.pad(a, ((0, pr), (0, pc)))


def _maybe_pad1d(a, n):
    p = n - a.shape[0]
    if p == 0:
        return a
    return jnp.pad(a, (0, p))


def _tpu_vmem_and_kind():
    """Best-effort hardware query (physical VMEM bytes, device-kind string)."""
    vmem = 64 * 2**20  # conservative (v7x-sized) default
    kind = ""
    try:
        vmem = int(pltpu.get_tpu_info().vmem_capacity_bytes)
    except Exception:
        pass
    try:
        kind = jax.devices()[0].device_kind.lower()
    except Exception:
        pass
    return vmem, kind


def _default_tiles(kind):
    """Per-generation (tm, tf) defaults.

    tm is the arithmetic-intensity knob (each row tile re-streams the weights
    from HBM), so it is sized to each chip's compute:HBM ratio.
    """
    if "v7" in kind:
        return 512, 512     # ~310 flop/byte needed; 64 MiB VMEM
    if "v6" in kind:
        return 768, 512     # ~650-700 flop/byte needed; 128 MiB VMEM
    if "v5" in kind:
        return 256, 512     # near compute-bound already on the 4x128 MXU
    return 256, 512


# ----------------------------------------------------------------------------
# Public entry point
# ----------------------------------------------------------------------------
def position_wise_feed_forward(x, w1, b1, w2, b2, *, tm=None, tf=None,
                               compute_dtype=None):
    """x: (B, S, H) -> (B, S, H).

    Weights stored pre-transposed vs. torch.nn.Linear:
      w1: (H, F), b1: (F,), w2: (F, H), b2: (H,)

    tm / tf: row / hidden_ff tile sizes; None picks generation-aware defaults
      (and the single-F-step fast path when the weights fit VMEM).
    compute_dtype: optional low-precision matmul dtype (e.g. jnp.bfloat16) for
      peak MXU throughput on v6e/v7x. Accumulation, bias and GELU stay f32 and
      the output keeps x's original dtype; results then deviate slightly from
      an f32 reference (standard mixed-precision recipe).
    """
    B, S, H = x.shape
    F = w1.shape[1]
    assert w1.shape == (H, F) and w2.shape == (F, H)
    assert b1.shape == (F,) and b2.shape == (H,)

    out_dtype = x.dtype
    if compute_dtype is not None:
        x = x.astype(compute_dtype)
        w1 = w1.astype(compute_dtype)
        w2 = w2.astype(compute_dtype)

    M = B * S
    H_pad = _round_up(H, 128)
    F_full = _round_up(F, 128)

    vmem_capacity, kind = _tpu_vmem_and_kind()
    # Generation-aware cap: ~108 MiB on 128 MiB parts, ~54 MiB on v7x's 64 MiB,
    # always leaving headroom for the compiler's internal scratch/semaphores.
    vmem_cap = int(min(0.85 * vmem_capacity, vmem_capacity - 8 * 2**20))
    tm_def, tf_def = _default_tiles(kind)

    # ---- row tile (tm): multiple of 8, no larger than the padded row count.
    tm = tm_def if tm is None else int(tm)
    tm = max(8, min(_round_up(tm, 8), _round_up(M, 8)))
    M_pad = _round_up(M, tm)
    # Ensure >= 2 row tiles when possible so both v7x TensorCores get work.
    while M_pad // tm < 2 and tm > 8:
        tm = _round_up(max(8, tm // 2), 8)
        M_pad = _round_up(M, tm)

    x_isz = jnp.dtype(x.dtype).itemsize
    w_isz = jnp.dtype(w1.dtype).itemsize
    o_isz = jnp.dtype(out_dtype).itemsize
    out_is_f32 = jnp.dtype(out_dtype) == jnp.dtype(jnp.float32)

    def _estimate(tm_, tf_):
        n_f_ = _round_up(F, tf_) // tf_
        use_scratch = (n_f_ > 1) and not out_is_f32
        e = (2 * tm_ * H_pad * x_isz          # x tiles (double-buffered)
             + 2 * H_pad * tf_ * w_isz        # w1 tiles
             + 2 * 8 * tf_ * w_isz            # b1 tiles (sublane-padded)
             + 2 * tf_ * H_pad * w_isz        # w2 tiles
             + 2 * 8 * H_pad * w_isz          # b2 tiles
             + 2 * tm_ * H_pad * o_isz)       # out tiles
        if use_scratch:
            e += tm_ * H_pad * 4              # f32 accumulator scratch
        return e

    # ---- hidden_ff tile (tf): choose tf first, then pad F up to it.
    if tf is None:
        # Fast path: one F step => weights DMA'd once for the whole kernel,
        # no accumulator read-modify-write.
        tf = F_full if _estimate(tm, F_full) <= vmem_cap else tf_def
    tf = max(128, min(_round_up(int(tf), 128), F_full))

    # ---- VMEM back-off: shrink tf first, then tm, until the footprint fits.
    while _estimate(tm, tf) > vmem_cap:
        if tf > 128:
            tf = max(128, _round_up(tf // 2, 128))
        elif tm > 8:
            tm = _round_up(max(8, tm // 2), 8)
            M_pad = _round_up(M, tm)
        else:
            break

    F_pad = _round_up(F, tf)
    n_f = F_pad // tf

    # ---- zero-pad operands (inert for the valid output region; padded rows
    #      are sliced away). Skipped entirely when already aligned.
    x2 = _maybe_pad2d(x.reshape(M, H), M_pad, H_pad)
    w1p = _maybe_pad2d(w1, H_pad, F_pad)
    b1p = _maybe_pad1d(b1, F_pad).reshape(1, F_pad)
    w2p = _maybe_pad2d(w2, F_pad, H_pad)
    b2p = _maybe_pad1d(b2, H_pad).reshape(1, H_pad)

    # ---- kernel variant selection.
    if n_f == 1:
        kernel = _ffn_kernel_single
        scratch = []
    elif out_is_f32:
        kernel = _ffn_kernel_acc_out       # accumulate directly into o_ref
        scratch = []
    else:
        kernel = _ffn_kernel_acc_scratch   # f32 scratch for low-prec output
        scratch = [pltpu.VMEM((tm, H_pad), jnp.float32)]

    est = _estimate(tm, tf)
    vmem_limit = int(min(vmem_cap, max(int(1.5 * est) + (4 << 20), 32 << 20)))

    grid = (M_pad // tm, n_f)

    out = pl.pallas_call(
        kernel,
        out_shape=jax.ShapeDtypeStruct((M_pad, H_pad), out_dtype),
        grid_spec=pltpu.PrefetchScalarGridSpec(
            num_scalar_prefetch=0,
            grid=grid,
            in_specs=[
                pl.BlockSpec((tm, H_pad), lambda i, f: (i, 0)),   # x row tile
                pl.BlockSpec((H_pad, tf), lambda i, f: (0, f)),   # w1 F-tile
                pl.BlockSpec((1, tf),     lambda i, f: (0, f)),   # b1 F-tile
                pl.BlockSpec((tf, H_pad), lambda i, f: (f, 0)),   # w2 F-tile
                pl.BlockSpec((1, H_pad),  lambda i, f: (0, 0)),   # b2
            ],
            out_specs=pl.BlockSpec((tm, H_pad), lambda i, f: (i, 0)),
            scratch_shapes=scratch,
        ),
        compiler_params=pltpu.CompilerParams(
            dimension_semantics=("parallel", "arbitrary"),
            vmem_limit_bytes=vmem_limit),
    )(x2, w1p, b1p, w2p, b2p)

    return out[:M, :H].reshape(B, S, H)


# ----------------------------------------------------------------------------
# Reference + tests
# ----------------------------------------------------------------------------
def _ref_ffn(x, w1, b1, w2, b2):
    h = jnp.einsum("bsh,hf->bsf", x, w1) + b1
    h = h * 0.5 * (1.0 + lax.erf(h / math.sqrt(2.0)))
    return jnp.einsum("bsf,fh->bsh", h, w2) + b2


def _make_params(key, H, F, dtype=jnp.float32):
    k1, k2, k3, k4 = jax.random.split(key, 4)
    bound1 = 1.0 / math.sqrt(H)
    bound2 = 1.0 / math.sqrt(F)
    w1 = jax.random.uniform(k1, (H, F), dtype, -bound1, bound1)
    b1 = jax.random.uniform(k2, (F,), dtype, -bound1, bound1)
    w2 = jax.random.uniform(k3, (F, H), dtype, -bound2, bound2)
    b2 = jax.random.uniform(k4, (H,), dtype, -bound2, bound2)
    return w1, b1, w2, b2


if __name__ == "__main__":
    key = jax.random.PRNGKey(0)

    # --- Test 1: module-sized small config (batch=2, seq=8, hidden=32, ff=64).
    #     Exercises the single-F-step fast path (exact f32 math).
    B, S, H, FF = 2, 8, 32, 64
    kx, kp = jax.random.split(key)
    x = jax.random.normal(kx, (B, S, H), dtype=jnp.float32)
    w1, b1, w2, b2 = _make_params(kp, H, FF)

    out = jax.block_until_ready(position_wise_feed_forward(x, w1, b1, w2, b2))
    ref = _ref_ffn(x, w1, b1, w2, b2)
    assert out.shape == (B, S, H)
    assert jnp.allclose(out, ref, atol=1e-5, rtol=1e-5), "mismatch (test 1)"

    # --- Test 2: ragged M=200, H=96, FF=320; forced tf=128 => multiple F
    #     steps with the in-place f32 output accumulation path.
    B2, S2, H2, FF2 = 2, 100, 96, 320
    kx2, kp2 = jax.random.split(jax.random.fold_in(key, 1))
    x2 = jax.random.normal(kx2, (B2, S2, H2), dtype=jnp.float32)
    p2 = _make_params(kp2, H2, FF2)

    out2 = jax.block_until_ready(
        position_wise_feed_forward(x2, *p2, tm=64, tf=128))
    ref2 = _ref_ffn(x2, *p2)
    assert out2.shape == (B2, S2, H2)
    assert jnp.allclose(out2, ref2, atol=1e-4, rtol=1e-4), "mismatch (test 2)"

    # --- Test 3: bf16 inputs/weights, forced tf=128 => multiple F steps with
    #     the f32 scratch accumulator path (low-precision output).
    B3, S3, H3, FF3 = 2, 16, 128, 512
    kx3, kp3 = jax.random.split(jax.random.fold_in(key, 2))
    x3 = jax.random.normal(kx3, (B3, S3, H3), dtype=jnp.float32).astype(jnp.bfloat16)
    p3 = [p.astype(jnp.bfloat16) for p in _make_params(kp3, H3, FF3)]

    out3 = jax.block_until_ready(
        position_wise_feed_forward(x3, *p3, tf=128))
    ref3 = _ref_ffn(x3.astype(jnp.float32),
                    *[p.astype(jnp.float32) for p in p3])
    assert out3.shape == (B3, S3, H3)
    assert jnp.allclose(out3.astype(jnp.float32), ref3,
                        atol=5e-2, rtol=5e-2), "mismatch (test 3)"

    # --- Test 4: f32 inputs with compute_dtype=bf16 (wrapper-side cast; the
    #     output stays f32 and accumulates in place).
    B4, S4, H4, FF4 = 2, 8, 64, 256
    kx4, kp4 = jax.random.split(jax.random.fold_in(key, 3))
    x4 = jax.random.normal(kx4, (B4, S4, H4), dtype=jnp.float32)
    p4 = _make_params(kp4, H4, FF4)

    out4 = jax.block_until_ready(
        position_wise_feed_forward(x4, *p4, compute_dtype=jnp.bfloat16))
    ref4 = _ref_ffn(x4, *p4)
    assert out4.shape == (B4, S4, H4)
    assert jnp.allclose(out4, ref4, atol=5e-2, rtol=5e-2), "mismatch (test 4)"

    print("KERNEL_OK")
</pallas_src>

<mosaic_0001>
module attributes {stable_mosaic.version = 11 : i64} {
  func.func @_ffn_kernel_single(%arg0: i32, %arg1: i32, %arg2: memref<8x128xf32, #tpu.memory_space<vmem>>, %arg3: memref<128x128xf32, #tpu.memory_space<vmem>>, %arg4: memref<1x128xf32, #tpu.memory_space<vmem>>, %arg5: memref<128x128xf32, #tpu.memory_space<vmem>>, %arg6: memref<1x128xf32, #tpu.memory_space<vmem>>, %arg7: memref<8x128xf32, #tpu.memory_space<vmem>>) attributes {dimension_semantics = [#tpu.dimension_semantics<parallel>, #tpu.dimension_semantics<arbitrary>], iteration_bounds = array<i64: 2, 1>, scalar_prefetch = 0 : i64, scratch_operands = 0 : i64, tpu.core_type = #tpu.core_type<tc>, window_params = [{transform_indices = @transform_0, window_bounds = array<i64: 8, 128>}, {transform_indices = @transform_1, window_bounds = array<i64: 128, 128>}, {transform_indices = @transform_2, window_bounds = array<i64: 1, 128>}, {transform_indices = @transform_3, window_bounds = array<i64: 128, 128>}, {pipeline_mode = #tpu.pipeline_mode<synchronous>, transform_indices = @transform_4, window_bounds = array<i64: 1, 128>}, {transform_indices = @transform_5, window_bounds = array<i64: 8, 128>}]} {
    %c0 = arith.constant 0 : index
    %c0_0 = arith.constant 0 : index
    %0 = vector.load %arg2[%c0, %c0_0] : memref<8x128xf32, #tpu.memory_space<vmem>>, vector<8x128xf32>
    %c0_1 = arith.constant 0 : index
    %c0_2 = arith.constant 0 : index
    %1 = vector.load %arg3[%c0_1, %c0_2] : memref<128x128xf32, #tpu.memory_space<vmem>>, vector<128x128xf32>
    %cst = arith.constant dense<0.000000e+00> : vector<8x128xf32>
    %2 = tpu.matmul %0, %1, %cst {dimension_numbers = #tpu.dot_dimension_numbers<[1], [0], [0], [1], [0, 0, 1, 1], [], []>} : vector<8x128xf32>, vector<128x128xf32>, vector<8x128xf32> -> vector<8x128xf32>
    %c0_3 = arith.constant 0 : index
    %c0_4 = arith.constant 0 : index
    %3 = vector.load %arg4[%c0_3, %c0_4] : memref<1x128xf32, #tpu.memory_space<vmem>>, vector<1x128xf32>
    %4 = vector.broadcast %3 : vector<1x128xf32> to vector<8x128xf32>
    %5 = arith.addf %2, %4 : vector<8x128xf32>
    %cst_5 = arith.constant 5.000000e-01 : f32
    %6 = vector.broadcast %cst_5 : f32 to vector<8x128xf32>
    %7 = arith.mulf %5, %6 : vector<8x128xf32>
    %cst_6 = arith.constant 1.41421354 : f32
    %8 = vector.broadcast %cst_6 : f32 to vector<8x128xf32>
    %9 = arith.divf %5, %8 : vector<8x128xf32>
    %10 = math.erf %9 : vector<8x128xf32>
    %cst_7 = arith.constant 1.000000e+00 : f32
    %11 = vector.broadcast %cst_7 : f32 to vector<8x128xf32>
    %12 = arith.addf %11, %10 : vector<8x128xf32>
    %13 = arith.mulf %7, %12 : vector<8x128xf32>
    %c0_8 = arith.constant 0 : index
    %c0_9 = arith.constant 0 : index
    %14 = vector.load %arg5[%c0_8, %c0_9] : memref<128x128xf32, #tpu.memory_space<vmem>>, vector<128x128xf32>
    %cst_10 = arith.constant dense<0.000000e+00> : vector<8x128xf32>
    %15 = tpu.matmul %13, %14, %cst_10 {dimension_numbers = #tpu.dot_dimension_numbers<[1], [0], [0], [1], [0, 0, 1, 1], [], []>} : vector<8x128xf32>, vector<128x128xf32>, vector<8x128xf32> -> vector<8x128xf32>
    %c0_11 = arith.constant 0 : index
    %c0_12 = arith.constant 0 : index
    %16 = vector.load %arg6[%c0_11, %c0_12] : memref<1x128xf32, #tpu.memory_space<vmem>>, vector<1x128xf32>
    %17 = vector.broadcast %16 : vector<1x128xf32> to vector<8x128xf32>
    %18 = arith.addf %15, %17 : vector<8x128xf32>
    %c0_13 = arith.constant 0 : index
    %c0_14 = arith.constant 0 : index
    %19 = vector.load %arg7[%c0_13, %c0_14] : memref<8x128xf32, #tpu.memory_space<vmem>>, vector<8x128xf32>
    tpu.vector_store %arg7[%c0_13, %c0_14], %18 {strides = array<i32>} : memref<8x128xf32, #tpu.memory_space<vmem>>, vector<8x128xf32>,
    return
  }
  func.func @transform_0(%arg0: i32, %arg1: i32) -> (i32, i32) {
    %c0_i32 = arith.constant 0 : i32
    %c0_i32_0 = arith.constant 0 : i32
    return %arg0, %c0_i32 : i32, i32
  }
  func.func @transform_1(%arg0: i32, %arg1: i32) -> (i32, i32) {
    %c0_i32 = arith.constant 0 : i32
    %c0_i32_0 = arith.constant 0 : i32
    return %c0_i32, %arg1 : i32, i32
  }
  func.func @transform_2(%arg0: i32, %arg1: i32) -> (i32, i32) {
    %c0_i32 = arith.constant 0 : i32
    %c0_i32_0 = arith.constant 0 : i32
    return %c0_i32, %arg1 : i32, i32
  }
  func.func @transform_3(%arg0: i32, %arg1: i32) -> (i32, i32) {
    %c0_i32 = arith.constant 0 : i32
    %c0_i32_0 = arith.constant 0 : i32
    return %arg1, %c0_i32 : i32, i32
  }
  func.func @transform_4(%arg0: i32, %arg1: i32) -> (i32, i32) {
    %c0_i32 = arith.constant 0 : i32
    %c0_i32_0 = arith.constant 0 : i32
    %c0_i32_1 = arith.constant 0 : i32
    return %c0_i32, %c0_i32_0 : i32, i32
  }
  func.func @transform_5(%arg0: i32, %arg1: i32) -> (i32, i32) {
    %c0_i32 = arith.constant 0 : i32
    %c0_i32_0 = arith.constant 0 : i32
    return %arg0, %c0_i32 : i32, i32
  }
}

</mosaic_0001>

<bundles_post_ra>
// kernel: tpu_custom_call.1
= control target key start
LH: loop header
LB: loop body
LE: loop exit
PB: predicated region body
PF: predicated region fallthrough
CT: control target
= control target key end

     0   :  { %s1276_s0 = inlined_call_operand.hbm [shape: f32[16,128], index: 0, kind: input, shape index: {}]   ;;  %s1277_s1 = inlined_call_operand.hbm [shape: f32[128,128], index: 1, kind: input, shape index: {}]   ;;  %s1278_s2 = inlined_call_operand.vmem [shape: f32[1,128], index: 2, kind: input, shape index: {}]   ;;  %s1279_s3 = inlined_call_operand.hbm [shape: f32[128,128], index: 3, kind: input, shape index: {}]   ;;  %s1280_s4 = inlined_call_operand.vmem [shape: f32[1,128], index: 4, kind: input, shape index: {}]   ;;  %s1281_s5 = inlined_call_operand.hbm [shape: f32[16,128], index: 5, kind: output, shape index: {}]  }
   0x1   :  { %1285 = sst [smem:[#allocation12_spill]] %s1277_s1 }
   0x2   :  { %10 = vsyncpa [#allocation3], 0 }
   0x3   :  { %12 = vsyncpa [#allocation3 + $0x1], 0 }
   0x4   :  { %13 = vsyncpa [#allocation6], 0 }
   0x5   :  { %14 = vsyncpa [#allocation4], 0 }
   0x6   :  { %16 = vsyncpa [#allocation4 + $0x1], 0  ;;  %s1049_s18 = smov 0   ;;  %s1051_s19 = smov 0  }
   0x7   :  { %s1053_s20 = smov 0   ;;  %s1055_s21 = smov 0  }
   0x8   :  { %s1057_s22 = smov 0   ;;  %s1059_s23 = smov 0  }
   0x9 LB: > { %s632_s24 = sadd.s32 4294967295, %s1009_s23   ;;  %s633_s25 = sadd.s32 4294967294, %s1009_s23   ;;  %s1009_s23 = sphi %s1059_s23, %s22_s23   ;;  %s1005_s22 = sphi %s1057_s22, %s1303_s22   ;;  %s1001_s21 = sphi %s1055_s21, %s1302_s21   ;;  %s997_s20 = sphi %s1053_s20, %s1301_s20   ;;  %s993_s19 = sphi %s1051_s19, %s1300_s19   ;;  %s989_s18 = sphi %s1049_s18, %s1299_s18  }
   0xa   : > { %p54_p0 = scmp.ne.s32.totalorder %s993_s19, %s989_s18  ;;  %p1083_p1 = scmp.eq.s32.totalorder %s632_s24, 0 }
   0xb   : > { %p1087_p2 = scmp.eq.s32.totalorder %s632_s24, 1  ;;  %p183_p3 = scmp.eq.s32.totalorder %s633_s25, 1 }
   0xc   : > { %s1286_s26 = scalar_select %p1083_p1, 1, 0 }
   0xd   : > { %p1093_p4 = por %p1083_p1, %p54_p0  ;;  %p634_p5 = scmp.ge.s32.totalorder %s1009_s23, 1 }
   0xe   : > { %p1098_p6 = por %p183_p3, %p54_p0  ;;  %p190_p7 = scmp.lt.s32.totalorder %s1009_s23, 3 }
   0xf   : > { %s1288_s28 = scalar_select %p1093_p4, 1, 0 }
  0x10   : > { %s1289_s29 = scalar_select %p1098_p6, 1, 0 }
  0x11   : > { %p1103_p8 = pnand %p634_p5, %p190_p7  ;;  %s1011_s6 = smov [#allocation5]  }
  0x12   : > { %s204_s7 = sshll.u32 %s1011_s6, 4  ;;  %s1012_s9 = smov [#allocation7]   ;;  %s205_s7 = int_to_ptr.vmem [resolvable:$true] %s204_s7 }
  0x13   : > { %p768_p9 = pneg %p1103_p8  ;;  %s226_s10 = sshll.u32 %s1012_s9, 4  ;;  %s227_s10 = int_to_ptr.vmem [resolvable:$true] %s226_s10 }
  0x14   : > { %s856_s11 = scalar_lea.vmem %s205_s7, 2048  ;;  %p864_p5 = scmp.lt.s32.totalorder %s205_s7, %s205_s7 }
  0x15   : > { %p1112_p11 = pnand %p768_p9, %p1083_p1  ;;  %p857_p13 = scmp.ne.s32.totalorder %s205_s7, %s856_s11 }
  0x16   : > { %p865_p7 = scmp.lt.s32.totalorder %s856_s11, %s856_s11 }
  0x17   : > { %p847_p12 = pneg %p1112_p11 }
  0x18   : > { %p866_p10 = por %p865_p7, %p864_p5 }
  0x19   : > { %p859_p0 = pnand %p857_p13, %p847_p12 }
  0x1b   : > { %p860_p3 = pneg %p859_p0 }
  0x1d   : > { %p867_p9 = pnand %p866_p10, %p860_p3 }
  0x1f   : > { %870 = shalt.err (!%p867_p9)
}
  0x20   : > { %s1013_s12 = smov 128   ;;  %s1014_s13 = smov 8  }
  0x21   : > { %s1292_s1 = sld [smem:[#allocation12_spill]]  ;;  %s882_s16 = scalar_lea.vmem %s227_s10, 2048 }
  0x22   : > { %p883_p6 = scmp.ne.s32.totalorder %s227_s10, %s882_s16  ;;  %p890_p1 = scmp.lt.s32.totalorder %s227_s10, %s227_s10 }
  0x23   : > { %p891_p4 = scmp.lt.s32.totalorder %s882_s16, %s882_s16 }
  0x24   : > { %p885_p13 = pnand %p883_p6, %p847_p12 }
  0x25   : > { %p892_p5 = por %p891_p4, %p890_p1 }
  0x26   : > { %p886_p0 = pneg %p885_p13 }
  0x27   : > { %771 = dma.hbm_to_vmem [thread:$0]  (!%p1112_p11), %s1292_s1, 2048, %s205_s7, [#allocation6], %s1013_s12, %s1013_s12, %s1014_s13  }
  0x28   : > { %p893_p10 = pnand %p892_p5, %p886_p0 }
  0x2a   : > { %896 = shalt.err (!%p893_p10)
}
  0x2b   : > { %774 = dma.hbm_to_vmem [thread:$0]  (!%p1112_p11), %s1279_s3, 2048, %s227_s10, [#allocation6], %s1013_s12, %s1013_s12, %s1014_s13  }
  0x2c   : > { %s34_s25 = sadd.s32 1, %s1005_s22  ;;  %s41_s6 = sadd.s32 1, %s997_s20 }
  0x2d   : > { %p36_p1 = scmp.ge.s32.totalorder %s34_s25, 2  ;;  %p48_p4 = scmp.ne.s32.totalorder %s997_s20, %s993_s19 }
  0x2e   : > { %p49_p6 = scmp.eq.s32.totalorder %s1009_s23, 0  ;;  %p785_p12 = scmp.lt.s32.totalorder %s1009_s23, 2 }
  0x2f   : > { %s1305_s25 = smov (%p36_p1, %s34_s25), 0  ;;  %p1144_p7 = por %p1087_p2, %p48_p4 }
  0x30   : > { %p50_p3 = por %p49_p6, %p48_p4  ;;  %s38_s8 = ssub.s32 %s1005_s22, %s1305_s25 }
  0x31   : > { %s243_s9 = sand.u32 1, %s997_s20   ;;  %p39_p9 = scmp.eq.s32.totalorder %s38_s8, 0 }
  0x32   : > { %s639_s10 = sshll.u32 %s243_s9, 3  ;;  %s640_s11 = sshll.u32 %s1005_s22, 7 }
  0x33   : > { %s1153_s12 = scalar_select %p39_p9, %s997_s20, %s41_s6  }
  0x34   : > { %s252_s15 = scalar_lea.hbm %s1276_s0, %s640_s11  ;;  %s247_s16 = scalar_lea.vmem [#allocation2], %s639_s10 }
  0x35   : > { %s254_s17 = sshll.u32 %s247_s16, 4  ;;  %p1160_p11 = pnand %p785_p12, %p50_p3  ;;  %s255_s17 = int_to_ptr.vmem [resolvable:$true] %s254_s17 }
  0x36   : > { %s244_s24 = scalar_lea.sflag [#allocation3], %s243_s9  ;;  %s910_s8 = scalar_lea.vmem %s255_s17, 128 }
  0x37   : > { %p899_p2 = pneg %p1160_p11  ;;  %p911_p13 = scmp.ne.s32.totalorder %s255_s17, %s910_s8 }
  0x38   : > { %s1015_s6 = smov [#allocation2]  }
  0x39   : > { %p913_p0 = pnand %p911_p13, %p899_p2  ;;  %s915_s1 = sshll.u32 %s1015_s6, 4  ;;  %s916_s1 = int_to_ptr.vmem [resolvable:$false] %s915_s1 }
  0x3a   : > { %s917_s11 = scalar_lea.vmem %s916_s1, 256  ;;  %p918_p10 = scmp.lt.s32.totalorder %s255_s17, %s916_s1 }
  0x3b   : > { %p914_p5 = pneg %p913_p0  ;;  %p919_p1 = scmp.lt.s32.totalorder %s917_s11, %s910_s8 }
  0x3d   : > { %p920_p4 = por %p919_p1, %p918_p10 }
  0x3f   : > { %p921_p6 = pnand %p920_p4, %p914_p5 }
  0x41   : > { %924 = shalt.err (!%p921_p6)
}
  0x42   : > { %778 = dma.hbm_to_vmem [thread:$0]  (!%p1160_p11), %s252_s15, 128, %s255_s17, %s244_s24  }
  0x43   : > { %263 = sbr.rel (%p1103_p8) target bundleno = 533 (0x215), region = 40  ;;  %s1171_s9 = sand.u32 (!%p1103_p8), 1, %s993_s19  }
  0x44   : > { %s642_s10 = sshll.u32 (!%p1103_p8), %s1171_s9, 3  ;;  %s266_s13 = scalar_lea.sflag (!%p1103_p8), [#allocation3], %s1171_s9 }
  0x45   : > { %s1177_s1 = scalar_lea.vmem (!%p1103_p8), [#allocation2], %s642_s10  ;;  %p1295_p12 = scmp.ne.s32.totalorder (!%p1103_p8), %s1288_s28, 0 }
  0x48   : > { %976 = dma.done.wait (%p1295_p12), %s266_s13, 128  }
  0x49   : > { %978 = vsyncadd (%p1295_p12), %s266_s13, 4294967168  ;;  %p1296_p3 = scmp.ne.s32.totalorder %s1286_s26, 0 }
  0x4b   : > { %980 = dma.done.wait (%p1296_p3), [#allocation6], 4096  }
  0x4c   : > { %982 = vsyncadd (%p1296_p3), [#allocation6], 4294963200  ;;  %v1016_v0 = vmov 0.0   ;;  %vm1017_vm0 = vmmov 0   ;;  %v327_v1 = vld [vmem:[#allocation5 + $0x78] sm:$0xff]  ;;  %v326_v2 = vld [vmem:[#allocation5 + $0x70] sm:$0xff] }
  0x4d   : > { %686 = vmatprep.subr.mxu0 %v1016_v0  ;;  %718 = vmatprep.mubr.msk.f32.mxu0 %vm1017_vm0, %v1016_v0  ;;  %v325_v3 = vld [vmem:[#allocation5 + $0x68] sm:$0xff]  ;;  %v324_v4 = vld [vmem:[#allocation5 + $0x60] sm:$0xff]  ;;  %v426_v5 = vld [vmem:[#allocation7 + $0x78] sm:$0xff]  ;;  %s649_s15 = sshll.u32 %s1001_s21, 7  ;;  %s306_s16 = scalar_lea.vmem [#allocation8], %s642_s10 }
  0x4e   : > { %721 = vmatprep.subr.mxu1 %v1016_v0  ;;  %753 = vmatprep.mubr.msk.f32.mxu1 %vm1017_vm0, %v1016_v0  ;;  %v323_v6 = vld [vmem:[#allocation5 + $0x58] sm:$0xff]  ;;  %v425_v7 = vld [vmem:[#allocation7 + $0x70] sm:$0xff]  ;;  %v424_v8 = vld [vmem:[#allocation7 + $0x68] sm:$0xff]  ;;  %s519_s17 = sshll.u32 %s306_s16, 4  ;;  %s1234_s8 = scalar_lea.hbm %s1281_s5, %s649_s15  ;;  %s520_s17 = int_to_ptr.vmem [resolvable:$true] %s519_s17 }
  0x4f   : > { %687 = vmatpush3.msra.mxu0 %v327_v1  ;;  %722 = vmatpush3.msra.mxu1 %v426_v5  ;;  %v322_v9 = vld [vmem:[#allocation5 + $0x50] sm:$0xff]  ;;  %v423_v10 = vld [vmem:[#allocation7 + $0x60] sm:$0xff]  ;;  %v321_v11 = vld [vmem:[#allocation5 + $0x48] sm:$0xff]  ;;  %s506_s6 = scalar_lea.sflag [#allocation4], %s1171_s9  ;;  %s925_s11 = scalar_lea.vmem %s520_s17, 128 }
  0x50   : > { %688 = vmatprep.subr.mxu0 %v1016_v0  ;;  %723 = vmatprep.subr.mxu1 %v1016_v0  ;;  %v320_v12 = vld [vmem:[#allocation5 + $0x40] sm:$0xff]  ;;  %v319_v13 = vld [vmem:[#allocation5 + $0x38] sm:$0xff]  ;;  %v318_v14 = vld [vmem:[#allocation5 + $0x30] sm:$0xff]  ;;  %p926_p8 = scmp.ne.s32.totalorder %s520_s17, %s925_s11  ;;  %s1018_s21 = smov [#allocation8]  }
  0x51   : > { %689 = vmatpush3.msra.mxu0 %v326_v2  ;;  %724 = vmatpush3.msra.mxu1 %v425_v7  ;;  %v317_v15 = vld [vmem:[#allocation5 + $0x28] sm:$0xff]  ;;  %v316_v16 = vld [vmem:[#allocation5 + $0x20] sm:$0xff]  ;;  %v315_v17 = vld [vmem:[#allocation5 + $0x18] sm:$0xff]  ;;  %s929_s13 = sshll.u32 %s1018_s21, 4  ;;  %s930_s13 = int_to_ptr.vmem [resolvable:$false] %s929_s13 }
  0x52   : > { %690 = vmatprep.subr.mxu0 %v1016_v0  ;;  %725 = vmatprep.subr.mxu1 %v1016_v0  ;;  %v314_v18 = vld [vmem:[#allocation5 + $0x10] sm:$0xff]  ;;  %v313_v19 = vld [vmem:[#allocation5 + $0x8] sm:$0xff]  ;;  %v312_v20 = vld [vmem:[#allocation5] sm:$0xff]  ;;  %p927_p9 = pnand %p926_p8, %p1144_p7  ;;  %s931_s10 = scalar_lea.vmem %s930_s13, 256 }
  0x53   : > { %691 = vmatpush3.msra.mxu0 %v325_v3  ;;  %726 = vmatpush3.msra.mxu1 %v424_v8  ;;  %v311_v21 = vld [vmem:[%s1177_s1] sm:$0xff]  ;;  %v420_v24 = vld [vmem:[#allocation7 + $0x48] sm:$0xff]  ;;  %v419_v25 = vld [vmem:[#allocation7 + $0x40] sm:$0xff]  ;;  %p932_p2 = scmp.lt.s32.totalorder %s520_s17, %s930_s13  ;;  %p933_p13 = scmp.lt.s32.totalorder %s931_s10, %s925_s11 }
  0x54   : > { %692 = vmatprep.subr.mxu0 %v1016_v0  ;;  %727 = vmatprep.subr.mxu1 %v1016_v0  ;;  %v422_v22 = vld [vmem:[#allocation7 + $0x58] sm:$0xff]  ;;  %v421_v23 = vld [vmem:[#allocation7 + $0x50] sm:$0xff]  ;;  %v416_v28 = vld [vmem:[#allocation7 + $0x28] sm:$0xff]  ;;  %p928_p11 = pneg %p927_p9 }
  0x55   : > { %693 = vmatpush3.msra.mxu0 %v324_v4  ;;  %728 = vmatpush3.msra.mxu1 %v423_v10  ;;  %v418_v26 = vld [vmem:[#allocation7 + $0x38] sm:$0xff]  ;;  %v417_v27 = vld [vmem:[#allocation7 + $0x30] sm:$0xff]  ;;  %v415_v29 = vld [vmem:[#allocation7 + $0x20] sm:$0xff]  ;;  %p934_p0 = por %p933_p13, %p932_p2 }
  0x56   : > { %694 = vmatprep.subr.mxu0 %v1016_v0  ;;  %729 = vmatprep.subr.mxu1 %v1016_v0  ;;  %v414_v30 = vld [vmem:[#allocation7 + $0x18] sm:$0xff]  ;;  %v413_v31 = vld [vmem:[#allocation7 + $0x10] sm:$0xff]  ;;  %v412_v32 = vld [vmem:[#allocation7 + $0x8] sm:$0xff] }
  0x57   : > { %695 = vmatpush3.msra.mxu0 %v323_v6  ;;  %730 = vmatpush3.msra.mxu1 %v422_v22  ;;  %v411_v33 = vld [vmem:[#allocation7] sm:$0xff]  ;;  %v646_v34 = vld [vmem:[%s1278_s2] ss:$0 sm:$0xff]  ;;  %p935_p5 = pnand %p934_p0, %p928_p11 }
  0x58   : > { %696 = vmatprep.subr.mxu0 %v1016_v0  ;;  %731 = vmatprep.subr.mxu1 %v1016_v0  ;;  %v647_v43 = vld [vmem:[%s1280_s4] ss:$0 sm:$0xff] }
  0x59   : > { %697 = vmatpush3.msra.mxu0 %v322_v9  ;;  %732 = vmatpush3.msra.mxu1 %v421_v23 }
  0x5a   : > { %698 = vmatprep.subr.mxu0 %v1016_v0  ;;  %733 = vmatprep.subr.mxu1 %v1016_v0 }
  0x5b   : > { %699 = vmatpush3.msra.mxu0 %v321_v11  ;;  %734 = vmatpush3.msra.mxu1 %v420_v24 }
  0x5c   : > { %700 = vmatprep.subr.mxu0 %v1016_v0  ;;  %735 = vmatprep.subr.mxu1 %v1016_v0 }
  0x5d   : > { %701 = vmatpush3.msra.mxu0 %v320_v12  ;;  %736 = vmatpush3.msra.mxu1 %v419_v25 }
  0x5e   : > { %702 = vmatprep.subr.mxu0 %v1016_v0  ;;  %737 = vmatprep.subr.mxu1 %v1016_v0 }
  0x5f   : > { %703 = vmatpush3.msra.mxu0 %v319_v13  ;;  %738 = vmatpush3.msra.mxu1 %v418_v26 }
  0x60   : > { %704 = vmatprep.subr.mxu0 %v1016_v0  ;;  %739 = vmatprep.subr.mxu1 %v1016_v0 }
  0x61   : > { %705 = vmatpush3.msra.mxu0 %v318_v14  ;;  %740 = vmatpush3.msra.mxu1 %v417_v27 }
  0x62   : > { %706 = vmatprep.subr.mxu0 %v1016_v0  ;;  %741 = vmatprep.subr.mxu1 %v1016_v0 }
  0x63   : > { %707 = vmatpush3.msra.mxu0 %v317_v15  ;;  %742 = vmatpush3.msra.mxu1 %v416_v28 }
  0x64   : > { %708 = vmatprep.subr.mxu0 %v1016_v0  ;;  %743 = vmatprep.subr.mxu1 %v1016_v0 }
  0x65   : > { %709 = vmatpush3.msra.mxu0 %v316_v16  ;;  %744 = vmatpush3.msra.mxu1 %v415_v29 }
  0x66   : > { %710 = vmatprep.subr.mxu0 %v1016_v0  ;;  %745 = vmatprep.subr.mxu1 %v1016_v0 }
  0x67   : > { %711 = vmatpush3.msra.mxu0 %v315_v17  ;;  %746 = vmatpush3.msra.mxu1 %v414_v30 }
  0x68   : > { %712 = vmatprep.subr.mxu0 %v1016_v0  ;;  %747 = vmatprep.subr.mxu1 %v1016_v0 }
  0x69   : > { %713 = vmatpush3.msra.mxu0 %v314_v18  ;;  %748 = vmatpush3.msra.mxu1 %v413_v31 }
  0x6a   : > { %714 = vmatprep.subr.mxu0 %v1016_v0  ;;  %749 = vmatprep.subr.mxu1 %v1016_v0 }
  0x6b   : > { %715 = vmatpush3.msra.mxu0 %v313_v19  ;;  %750 = vmatpush3.msra.mxu1 %v412_v32 }
  0x6c   : > { %716 = vmatprep.subr.mxu0 %v1016_v0  ;;  %751 = vmatprep.subr.mxu1 %v1016_v0 }
  0x6d   : > { %717 = vmatpush3.msra.mxu0 %v312_v20  ;;  %752 = vmatpush3.msra.mxu1 %v411_v33 }
  0x6e   : > { %719 = vmatmul.mubr.f32.vlgmr.msra.gmra.mxu0 %v311_v21 }
 0x12e   : > { %v401_v35 = vpop.f32.mrf.mxu0 }
 0x12f   : > { %v402_v36 = vadd.f32 %v646_v34, %v401_v35 }
 0x130   : > { %v720_v37 = vpop.f32.mrf.mxu0 }
 0x131   : > { %v407_v38 = vmul.f32 0.70710677, %v402_v36  ;;  %v405_v40 = vmul.f32 0.5, %v402_v36 }
 0x133   : > { %843 = verf.f32 %v407_v38 }
 0x140   : > { %v844_v39 = vpop.eup %843 }
 0x141   : > { %v409_v41 = vadd.f32 1.0, %v844_v39 }
 0x143   : > { %v410_v42 = vmul.f32 %v409_v41, %v405_v40 }
 0x145   : > { %754 = vmatmul.mubr.f32.vlgmr.msra.gmra.mxu1 %v410_v42 }
 0x205   : > { %v500_v44 = vpop.f32.mrf.mxu1 }
 0x206   : > { %v501_v45 = vadd.f32 %v647_v43, %v500_v44 }
 0x207   : > { %v755_v46 = vpop.f32.mrf.mxu1 }
 0x208   : > { %504 = vst [vmem:[%s306_s16] sm:$0xff] %v501_v45 }
 0x209   : > { %938 = shalt.err (!%p935_p5)
}
 0x20a   : > { %s939_s1 = scalar_lea.hbm %s1234_s8, 128  ;;  %s943_s28 = scalar_lea.hbm %s1281_s5, 256 }
 0x20b   : > { %p940_p10 = scmp.ne.s32.totalorder %s1234_s8, %s939_s1  ;;  %p944_p6 = scmp.lt.s32.totalorder %s1234_s8, %s1281_s5 }
 0x20c   : > { %p945_p12 = scmp.lt.s32.totalorder %s943_s28, %s939_s1 }
 0x20d   : > { %p941_p1 = pnand %p940_p10, %p1144_p7 }
 0x20e   : > { %p946_p3 = por %p945_p12, %p944_p6 }
 0x20f   : > { %p942_p4 = pneg %p941_p1 }
 0x211   : > { %p947_p8 = pnand %p946_p3, %p942_p4 }
 0x213   : > { %950 = shalt.err (!%p947_p8)
}
 0x214   : > { %766 = dma.vmem_to_hbm [thread:$0]  (%p1144_p7), %s520_s17, 128, %s1234_s8, %s506_s6  }
 0x215 PF: > { %s531_s15 = sand.u32 1, %s989_s18   ;;  %p1297_p9 = scmp.ne.s32.totalorder %s1289_s29, 0 }
 0x216   : > { %p1298_p11 = scmp.ge.s32.totalorder %s1009_s23, 2  ;;  %s532_s16 = scalar_lea.sflag [#allocation4], %s531_s15 }
 0x218   : > { %p780_p2 = pnand %p1298_p11, %p1297_p9 }
 0x21a   : > { %p781_p13 = pneg %p780_p2 }
 0x21c   : > { %984 = dma.done.wait (%p781_p13), %s532_s16, 128  }
 0x21d   : > { %986 = vsyncadd (%p781_p13), %s532_s16, 4294967168  ;;  %s22_s23 = sadd.s32 1, %s1009_s23   ;;  %s1299_s18 = smov %s993_s19 }
 0x21e   : > { %p19_p0 = scmp.ge.s32.totalorder %s22_s23, 4   ;;  %s1300_s19 = smov %s997_s20 }
 0x21f   : > { %s1301_s20 = smov %s1153_s12  ;;  %s1302_s21 = smov %s1005_s22 }
 0x220   : > { %s1303_s22 = smov %s1305_s25  ;;  %21 = sbr.rel (!%p19_p0) target bundleno = 9 (0x9), region = 98 }
 0x225   :  { %537 = vsyncpa [#allocation3], 1 }
 0x226   :  { %539 = vsyncpa [#allocation3 + $0x1], 1 }
 0x227   :  { %540 = vsyncpa [#allocation6], 1 }
 0x228   :  { %541 = vsyncpa [#allocation4], 1 }
 0x229   :  { %543 = vsyncpa [#allocation4 + $0x1], 1 }

</bundles_post_ra>
